<compile_context>
chip_gen: v6e
topology: v6e:2x2x1
jax: 0.10.0
libtpu: 0.0.40
codegen_flags: <defaults>
</compile_context>

<pallas_src>
import jax
import jax.numpy as jnp
from jax.experimental import pallas as pl
from jax.experimental.pallas import tpu as pltpu


def _num_embeddings_kernel(x_ref, w1_ref, b1_ref, w2_ref, b2_ref, o_ref):
    # x_ref : (block_b, n*d_f)        lane-dense batch tile
    # w1_ref: (n*d_f,  n*d_emb)       block-diagonal layer-1 weights
    # b1_ref: (1,      n*d_emb)
    # w2_ref: (n*d_emb, n*d_emb)      block-diagonal layer-2 weights
    # b2_ref: (1,      n*d_emb)
    # o_ref : (block_b, n*d_emb)      lane-dense output tile (single full store)
    h = jnp.dot(x_ref[...], w1_ref[...], preferred_element_type=jnp.float32)
    h = jnp.maximum(h + b1_ref[...], 0.0)
    y = jnp.dot(h.astype(w2_ref.dtype), w2_ref[...],
                preferred_element_type=jnp.float32)
    o_ref[...] = (y + b2_ref[...]).astype(o_ref.dtype)


def num_embeddings_forward(x, w1, b1, w2, b2, *, block_b=2048,
                           vmem_budget_bytes=24 * 1024 * 1024):
    """Fused NumEmbeddings(['linear','relu','linear']) forward.

    x : (B, n_features, d_feature)
    w1: (n_features, d_feature, d_embedding)    b1: (n_features, d_embedding)
    w2: (n_features, d_embedding, d_embedding)  b2: (n_features, d_embedding)
    returns (B, n_features, d_embedding)
    """
    B, n, d_f = x.shape
    d_emb = w1.shape[-1]
    itemsize = jnp.dtype(x.dtype).itemsize

    d_in = n * d_f
    d_out = n * d_emb

    def _round8(v):
        return -(-v // 8) * 8

    def _pad_lane(v):
        return -(-v // 128) * 128

    b_pad8 = _round8(B)

    # Ensure the "parallel" batch axis has >= 2 grid steps when the batch
    # allows (so both v7x TensorCores get work), then round to sublanes.
    if b_pad8 >= 16:
        block_b = min(block_b, _round8(-(-b_pad8 // 2)))
    block_b = max(8, min(_round8(block_b), b_pad8))

    # Conservative VMEM footprint including lane/sublane padding and
    # double-buffering of every operand.
    lane_in, lane_out = _pad_lane(d_in), _pad_lane(d_out)
    weight_bytes = (_round8(d_in) * lane_out + _round8(d_out) * lane_out
                    + 2 * 8 * lane_out) * itemsize

    def tile_bytes(bb):
        return 2 * (bb * (lane_in + lane_out) * itemsize + weight_bytes)

    while block_b > 8 and tile_bytes(block_b) > vmem_budget_bytes:
        block_b = max(8, _round8(block_b // 2))

    grid_b = pl.cdiv(b_pad8, block_b)
    b_full = grid_b * block_b

    # Zero-copy flatten of the row-major (B, n, d_f) input; pad batch only.
    x_flat = x.reshape(B, d_in)
    if b_full != B:
        x_flat = jnp.pad(x_flat, ((0, b_full - B), (0, 0)))

    # Block-diagonal weights / flattened biases (built once in the wrapper).
    eye_f = jnp.eye(n, dtype=w1.dtype)
    w1_bd = (w1[:, :, None, :] * eye_f[:, None, :, None]).reshape(d_in, d_out)
    w2_bd = (w2[:, :, None, :] * eye_f[:, None, :, None]).reshape(d_out, d_out)
    b1_flat = b1.reshape(1, d_out)
    b2_flat = b2.reshape(1, d_out)

    flops = 2 * b_full * (d_in * d_out + d_out * d_out)
    bytes_accessed = (x_flat.size + w1_bd.size + b1_flat.size + w2_bd.size
                      + b2_flat.size + b_full * d_out) * itemsize

    out_flat = pl.pallas_call(
        _num_embeddings_kernel,
        out_shape=jax.ShapeDtypeStruct((b_full, d_out), x.dtype),
        grid=(grid_b,),
        in_specs=[
            pl.BlockSpec((block_b, d_in), lambda i: (i, 0)),
            pl.BlockSpec((d_in, d_out), lambda i: (0, 0)),
            pl.BlockSpec((1, d_out), lambda i: (0, 0)),
            pl.BlockSpec((d_out, d_out), lambda i: (0, 0)),
            pl.BlockSpec((1, d_out), lambda i: (0, 0)),
        ],
        out_specs=pl.BlockSpec((block_b, d_out), lambda i: (i, 0)),
        compiler_params=pltpu.CompilerParams(
            dimension_semantics=("parallel",),
            vmem_limit_bytes=32 * 1024 * 1024),
        cost_estimate=pl.CostEstimate(flops=flops, transcendentals=0,
                                      bytes_accessed=bytes_accessed),
    )(x_flat, w1_bd, b1_flat, w2_bd, b2_flat)

    # (b_full, n*d_emb) row-major -> (B, n, d_emb): slice + zero-copy reshape.
    return out_flat[:B].reshape(B, n, d_emb)


if __name__ == "__main__":
    # Small shapes consistent with NumEmbeddings(['linear','relu','linear'], ...):
    batch, n_features, d_feature, d_embedding = 64, 4, 16, 32

    key = jax.random.PRNGKey(0)
    kx, k1, kb1, k2, kb2 = jax.random.split(key, 5)
    x = jax.random.normal(kx, (batch, n_features, d_feature), jnp.float32)
    w1 = 0.1 * jax.random.normal(k1, (n_features, d_feature, d_embedding), jnp.float32)
    b1 = 0.1 * jax.random.normal(kb1, (n_features, d_embedding), jnp.float32)
    w2 = 0.1 * jax.random.normal(k2, (n_features, d_embedding, d_embedding), jnp.float32)
    b2 = 0.1 * jax.random.normal(kb2, (n_features, d_embedding), jnp.float32)

    y = num_embeddings_forward(x, w1, b1, w2, b2)
    jax.block_until_ready(y)

    # Pure-JAX reference for NLinear -> ReLU -> NLinear (matches the PyTorch module).
    h_ref = jnp.einsum("bfi,fio->bfo", x, w1) + b1[None]
    h_ref = jnp.maximum(h_ref, 0.0)
    y_ref = jnp.einsum("bfi,fio->bfo", h_ref, w2) + b2[None]

    assert y.shape == (batch, n_features, d_embedding) and y.dtype == x.dtype
    assert jnp.allclose(y, y_ref, atol=1e-4, rtol=1e-4), float(jnp.max(jnp.abs(y - y_ref)))
    print("KERNEL_OK")
</pallas_src>

<mosaic_0001>
module attributes {stable_mosaic.version = 11 : i64} {
  func.func @_num_embeddings_kernel(%arg0: i32, %arg1: memref<32x64xf32, #tpu.memory_space<vmem>>, %arg2: memref<64x128xf32, #tpu.memory_space<vmem>>, %arg3: memref<1x128xf32, #tpu.memory_space<vmem>>, %arg4: memref<128x128xf32, #tpu.memory_space<vmem>>, %arg5: memref<1x128xf32, #tpu.memory_space<vmem>>, %arg6: memref<32x128xf32, #tpu.memory_space<vmem>>) attributes {dimension_semantics = [#tpu.dimension_semantics<parallel>], iteration_bounds = array<i64: 2>, scalar_prefetch = 0 : i64, scratch_operands = 0 : i64, tpu.core_type = #tpu.core_type<tc>, window_params = [{transform_indices = @transform_0, window_bounds = array<i64: 32, 64>}, {pipeline_mode = #tpu.pipeline_mode<synchronous>, transform_indices = @transform_1, window_bounds = array<i64: 64, 128>}, {pipeline_mode = #tpu.pipeline_mode<synchronous>, transform_indices = @transform_2, window_bounds = array<i64: 1, 128>}, {pipeline_mode = #tpu.pipeline_mode<synchronous>, transform_indices = @transform_3, window_bounds = array<i64: 128, 128>}, {pipeline_mode = #tpu.pipeline_mode<synchronous>, transform_indices = @transform_4, window_bounds = array<i64: 1, 128>}, {transform_indices = @transform_5, window_bounds = array<i64: 32, 128>}]} {
    %c0 = arith.constant 0 : index
    %c0_0 = arith.constant 0 : index
    %0 = vector.load %arg1[%c0, %c0_0] : memref<32x64xf32, #tpu.memory_space<vmem>>, vector<32x64xf32>
    %c0_1 = arith.constant 0 : index
    %c0_2 = arith.constant 0 : index
    %1 = vector.load %arg2[%c0_1, %c0_2] : memref<64x128xf32, #tpu.memory_space<vmem>>, vector<64x128xf32>
    %cst = arith.constant dense<0.000000e+00> : vector<32x128xf32>
    %2 = tpu.matmul %0, %1, %cst {dimension_numbers = #tpu.dot_dimension_numbers<[1], [0], [0], [1], [0, 0, 1, 1], [], []>} : vector<32x64xf32>, vector<64x128xf32>, vector<32x128xf32> -> vector<32x128xf32>
    %c0_3 = arith.constant 0 : index
    %c0_4 = arith.constant 0 : index
    %3 = vector.load %arg3[%c0_3, %c0_4] : memref<1x128xf32, #tpu.memory_space<vmem>>, vector<1x128xf32>
    %4 = vector.broadcast %3 : vector<1x128xf32> to vector<32x128xf32>
    %5 = arith.addf %2, %4 : vector<32x128xf32>
    %cst_5 = arith.constant 0.000000e+00 : f32
    %6 = vector.broadcast %cst_5 : f32 to vector<32x128xf32>
    %7 = arith.maximumf %5, %6 : vector<32x128xf32>
    %c0_6 = arith.constant 0 : index
    %c0_7 = arith.constant 0 : index
    %8 = vector.load %arg4[%c0_6, %c0_7] : memref<128x128xf32, #tpu.memory_space<vmem>>, vector<128x128xf32>
    %cst_8 = arith.constant dense<0.000000e+00> : vector<32x128xf32>
    %9 = tpu.matmul %7, %8, %cst_8 {dimension_numbers = #tpu.dot_dimension_numbers<[1], [0], [0], [1], [0, 0, 1, 1], [], []>} : vector<32x128xf32>, vector<128x128xf32>, vector<32x128xf32> -> vector<32x128xf32>
    %c0_9 = arith.constant 0 : index
    %c0_10 = arith.constant 0 : index
    %10 = vector.load %arg5[%c0_9, %c0_10] : memref<1x128xf32, #tpu.memory_space<vmem>>, vector<1x128xf32>
    %11 = vector.broadcast %10 : vector<1x128xf32> to vector<32x128xf32>
    %12 = arith.addf %9, %11 : vector<32x128xf32>
    %c0_11 = arith.constant 0 : index
    %c0_12 = arith.constant 0 : index
    %13 = vector.load %arg6[%c0_11, %c0_12] : memref<32x128xf32, #tpu.memory_space<vmem>>, vector<32x128xf32>
    tpu.vector_store %arg6[%c0_11, %c0_12], %12 {strides = array<i32>} : memref<32x128xf32, #tpu.memory_space<vmem>>, vector<32x128xf32>,
    return
  }
  func.func @transform_0(%arg0: i32) -> (i32, i32) {
    %c0_i32 = arith.constant 0 : i32
    %c0_i32_0 = arith.constant 0 : i32
    return %arg0, %c0_i32 : i32, i32
  }
  func.func @transform_1(%arg0: i32) -> (i32, i32) {
    %c0_i32 = arith.constant 0 : i32
    %c0_i32_0 = arith.constant 0 : i32
    %c0_i32_1 = arith.constant 0 : i32
    return %c0_i32, %c0_i32_0 : i32, i32
  }
  func.func @transform_2(%arg0: i32) -> (i32, i32) {
    %c0_i32 = arith.constant 0 : i32
    %c0_i32_0 = arith.constant 0 : i32
    %c0_i32_1 = arith.constant 0 : i32
    return %c0_i32, %c0_i32_0 : i32, i32
  }
  func.func @transform_3(%arg0: i32) -> (i32, i32) {
    %c0_i32 = arith.constant 0 : i32
    %c0_i32_0 = arith.constant 0 : i32
    %c0_i32_1 = arith.constant 0 : i32
    return %c0_i32, %c0_i32_0 : i32, i32
  }
  func.func @transform_4(%arg0: i32) -> (i32, i32) {
    %c0_i32 = arith.constant 0 : i32
    %c0_i32_0 = arith.constant 0 : i32
    %c0_i32_1 = arith.constant 0 : i32
    return %c0_i32, %c0_i32_0 : i32, i32
  }
  func.func @transform_5(%arg0: i32) -> (i32, i32) {
    %c0_i32 = arith.constant 0 : i32
    %c0_i32_0 = arith.constant 0 : i32
    return %arg0, %c0_i32 : i32, i32
  }
}

</mosaic_0001>

<bundles_post_ra>
// kernel: tpu_custom_call.1
= control target key start
LH: loop header
LB: loop body
LE: loop exit
PB: predicated region body
PF: predicated region fallthrough
CT: control target
= control target key end

     0   :  { %10 = vsyncpa [#allocation3], 0  ;;  %s1207_s0 = inlined_call_operand.hbm [shape: f32[64,64], index: 0, kind: input, shape index: {}]   ;;  %s1208_s1 = inlined_call_operand.hbm [shape: f32[64,128], index: 1, kind: input, shape index: {}]   ;;  %s1209_s2 = inlined_call_operand.vmem [shape: f32[1,128], index: 2, kind: input, shape index: {}]   ;;  %s1210_s3 = inlined_call_operand.hbm [shape: f32[128,128], index: 3, kind: input, shape index: {}]   ;;  %s1211_s4 = inlined_call_operand.vmem [shape: f32[1,128], index: 4, kind: input, shape index: {}]   ;;  %s1212_s5 = inlined_call_operand.hbm [shape: f32[64,128], index: 5, kind: output, shape index: {}]  }
   0x1   :  { %12 = vsyncpa [#allocation3 + $0x1], 0 }
   0x2   :  { %13 = vsyncpa [#allocation6], 0 }
   0x3   :  { %14 = vsyncpa [#allocation4], 0 }
   0x4   :  { %16 = vsyncpa [#allocation4 + $0x1], 0  ;;  %s990_s18 = smov 0   ;;  %s992_s19 = smov 0  }
   0x5   :  { %s994_s20 = smov 0   ;;  %s996_s21 = smov 0  }
   0x6 LB: > { %s1011_s22 = sadd.s32 4294967295, %s950_s21   ;;  %s613_s23 = sadd.s32 4294967294, %s950_s21   ;;  %s950_s21 = sphi %s996_s21, %s1235_s21   ;;  %s946_s20 = sphi %s994_s20, %s1234_s20   ;;  %s942_s19 = sphi %s992_s19, %s1233_s19   ;;  %s938_s18 = sphi %s990_s18, %s1232_s18  }
   0x7   : > { %p42_p0 = scmp.ne.s32.totalorder %s942_s19, %s938_s18  ;;  %p1213_p1 = scmp.eq.s32.totalorder %s1011_s22, 0 }
   0x8   : > { %p150_p2 = scmp.eq.s32.totalorder %s1011_s22, 1  ;;  %p156_p3 = scmp.eq.s32.totalorder %s613_s23, 1 }
   0x9   : > { %p1020_p4 = por %p1213_p1, %p42_p0  ;;  %p614_p5 = scmp.ge.s32.totalorder %s950_s21, 1 }
   0xa   : > { %p1025_p6 = por %p156_p3, %p42_p0  ;;  %p163_p7 = scmp.lt.s32.totalorder %s950_s21, 3 }
   0xb   : > { %s1218_s24 = scalar_select %p1020_p4, 1, 0 }
   0xc   : > { %s1219_s25 = scalar_select %p1025_p6, 1, 0 }
   0xd   : > { %p1030_p8 = pnand %p614_p5, %p163_p7  ;;  %s952_s27 = smov [#allocation5]  }
   0xe   : > { %s175_s28 = sshll.u32 %s952_s27, 4  ;;  %s953_s30 = smov [#allocation7]   ;;  %s176_s28 = int_to_ptr.vmem [resolvable:$true] %s175_s28 }
   0xf   : > { %s1220_s26 = scalar_select %p1030_p8, 1, 0 }
  0x10   : > { %p743_p9 = pneg %p1030_p8  ;;  %s191_s6 = sshll.u32 %s953_s30, 4  ;;  %s192_s6 = int_to_ptr.vmem [resolvable:$true] %s191_s6 }
  0x11   : > { %s813_s7 = scalar_lea.vmem %s176_s28, 1024  ;;  %p821_p5 = scmp.lt.s32.totalorder %s176_s28, %s176_s28 }
  0x12   : > { %p1039_p11 = pnand %p743_p9, %p1213_p1  ;;  %p814_p13 = scmp.ne.s32.totalorder %s176_s28, %s813_s7 }
  0x13   : > { %p822_p7 = scmp.lt.s32.totalorder %s813_s7, %s813_s7 }
  0x14   : > { %p804_p12 = pneg %p1039_p11 }
  0x15   : > { %p823_p10 = por %p822_p7, %p821_p5 }
  0x16   : > { %p816_p0 = pnand %p814_p13, %p804_p12 }
  0x18   : > { %p817_p3 = pneg %p816_p0 }
  0x1a   : > { %p824_p9 = pnand %p823_p10, %p817_p3 }
  0x1c   : > { %827 = shalt.err (!%p824_p9)
}
  0x1d   : > { %s1214_s8 = smov 128   ;;  %s955_s9 = smov 8  }
  0x1e   : > { %746 = dma.hbm_to_vmem [thread:$0]  (!%p1039_p11), %s1208_s1, 1024, %s176_s28, [#allocation6], %s1214_s8, %s1214_s8, %s955_s9  }
  0x1f   : > { %s839_s12 = scalar_lea.vmem %s192_s6, 2048  ;;  %p847_p10 = scmp.lt.s32.totalorder %s192_s6, %s192_s6 }
  0x20   : > { %p840_p13 = scmp.ne.s32.totalorder %s192_s6, %s839_s12  ;;  %p848_p3 = scmp.lt.s32.totalorder %s839_s12, %s839_s12 }
  0x22   : > { %p842_p0 = pnand %p840_p13, %p804_p12  ;;  %p849_p7 = por %p848_p3, %p847_p10 }
  0x24   : > { %p843_p5 = pneg %p842_p0 }
  0x26   : > { %p850_p9 = pnand %p849_p7, %p843_p5 }
  0x28   : > { %853 = shalt.err (!%p850_p9)
}
  0x29   : > { %749 = dma.hbm_to_vmem [thread:$0]  (!%p1039_p11), %s1210_s3, 2048, %s192_s6, [#allocation6], %s1214_s8, %s1214_s8, %s955_s9  }
  0x2a   : > { %s1068_s15 = sadd.s32 1, %s950_s21   ;;  %s29_s16 = sadd.s32 1, %s946_s20 }
  0x2b   : > { %s26_s17 = ssub.s32 %s950_s21, %s1068_s15  ;;  %p36_p12 = scmp.ne.s32.totalorder %s946_s20, %s942_s19 }
  0x2c   : > { %p27_p13 = scmp.eq.s32.totalorder %s26_s17, 0  ;;  %p37_p0 = scmp.eq.s32.totalorder %s950_s21, 0 }
  0x2d   : > { %p1078_p5 = por %p150_p2, %p36_p12  ;;  %p760_p10 = scmp.lt.s32.totalorder %s950_s21, 2 }
  0x2e   : > { %s1084_s27 = scalar_select %p27_p13, %s946_s20, %s29_s16  }
  0x2f   : > { %s1222_s23 = scalar_select %p1078_p5, 1, 0 }
  0x30   : > { %p38_p3 = por %p37_p0, %p36_p12  ;;  %s208_s28 = sand.u32 1, %s946_s20  }
  0x31   : > { %s618_s29 = sshll.u32 %s208_s28, 5  ;;  %s637_s30 = sshll.u32 %s950_s21, 9 }
  0x32   : > { %s1091_s10 = scalar_lea.hbm %s1207_s0, %s637_s30  ;;  %s212_s11 = scalar_lea.vmem [#allocation2], %s618_s29 }
  0x33   : > { %s219_s12 = sshll.u32 %s212_s11, 4  ;;  %p1095_p2 = pnand %p760_p10, %p38_p3  ;;  %s1093_s12 = int_to_ptr.vmem [resolvable:$true] %s219_s12 }
  0x34   : > { %s1099_s14 = scalar_lea.sflag [#allocation3], %s208_s28  ;;  %s854_s16 = scalar_lea.hbm %s1091_s10, 512 }
  0x35   : > { %p855_p11 = scmp.ne.s32.totalorder %s1091_s10, %s854_s16  ;;  %p856_p7 = pneg %p1095_p2 }
  0x36   : > { %s859_s29 = scalar_lea.hbm %s1207_s0, 1024  ;;  %p860_p13 = scmp.lt.s32.totalorder %s1091_s10, %s1207_s0 }
  0x37   : > { %p857_p9 = pnand %p856_p7, %p855_p11  ;;  %p861_p0 = scmp.lt.s32.totalorder %s859_s29, %s854_s16 }
  0x39   : > { %p858_p12 = pneg %p857_p9  ;;  %p862_p10 = por %p861_p0, %p860_p13 }
  0x3b   : > { %p863_p3 = pnand %p862_p10, %p858_p12 }
  0x3d   : > { %866 = shalt.err (!%p863_p3)
}
  0x3e   : > { %s867_s28 = scalar_lea.vmem %s1093_s12, 512  ;;  %s956_s11 = smov [#allocation2]  }
  0x3f   : > { %p868_p1 = scmp.ne.s32.totalorder %s1093_s12, %s867_s28  ;;  %s872_s8 = sshll.u32 %s956_s11, 4  ;;  %s873_s8 = int_to_ptr.vmem [resolvable:$false] %s872_s8 }
  0x40   : > { %s874_s17 = scalar_lea.vmem %s873_s8, 1024  ;;  %p875_p9 = scmp.lt.s32.totalorder %s1093_s12, %s873_s8 }
  0x41   : > { %p870_p6 = pnand %p868_p1, %p856_p7  ;;  %p876_p5 = scmp.lt.s32.totalorder %s874_s17, %s867_s28 }
  0x43   : > { %p871_p11 = pneg %p870_p6  ;;  %p877_p4 = por %p876_p5, %p875_p9 }
  0x45   : > { %p878_p8 = pnand %p877_p4, %p871_p11 }
  0x47   : > { %881 = shalt.err (!%p878_p8)
}
  0x48   : > { %s1224_s16 = smov 128   ;;  %p1225_p1 = scmp.ne.s32.totalorder %s1220_s26, 0 }
  0x49   : > { %753 = dma.hbm_to_vmem [thread:$0]  (!%p1095_p2), %s1091_s10, 512, %s1093_s12, %s1099_s14, %s1224_s16, %s1224_s16, %s955_s9  }
  0x4a   : > { %231 = sbr.rel (%p1225_p1) target bundleno = 515 (0x203), region = 40  ;;  %s1126_s30 = sand.u32 (!%p1225_p1), 1, %s942_s19  }
  0x4b   : > { %s622_s8 = sshll.u32 (!%p1225_p1), %s1126_s30, 5  ;;  %s234_s29 = scalar_lea.sflag (!%p1225_p1), [#allocation3], %s1126_s30 }
  0x4c   : > { %s1132_s13 = scalar_lea.vmem (!%p1225_p1), [#allocation2], %s622_s8  ;;  %p1226_p4 = scmp.ne.s32.totalorder (!%p1225_p1), %s1218_s24, 0 }
  0x4f   : > { %925 = dma.done.wait (%p1226_p4), %s234_s29, 512  }
  0x50   : > { %927 = vsyncadd (%p1226_p4), %s234_s29, 4294966784  ;;  %p1227_p6 = scmp.eq.s32.totalorder %s1011_s22, 0 }
  0x52   : > { %929 = dma.done.wait (%p1227_p6), [#allocation6], 3072   ;;  %p1228_p8 = pmov %p1227_p6 }
  0x53   : > { %v285_v0 = vld [vmem:[#allocation5 + $0x38] sm:$0xff]  ;;  %v284_v1 = vld [vmem:[#allocation5 + $0x30] sm:$0xff]  ;;  %vm293_vm0 = vcmask 523264   ;;  %v283_v2 = vld [vmem:[#allocation5 + $0x28] sm:$0xff]  ;;  %s271_s12 = scalar_lea.vmem [#allocation8], %s622_s8  ;;  %s638_s6 = sshll.u32 %s1011_s22, 9 }
  0x54   : > { %931 = vsyncadd (%p1228_p8), [#allocation6], 4294964224  ;;  %671 = vmatprep.subr.mxu0 %v285_v0  ;;  %v274_v3 = vld [vmem:[%s1132_s13] sm:$0xff]  ;;  %v410_v5 = vld [vmem:[#allocation7 + $0x78] sm:$0xff]  ;;  %s521_s14 = sshll.u32 %s271_s12, 4  ;;  %s1164_s11 = scalar_lea.hbm %s1212_s5, %s638_s6  ;;  %s1159_s14 = int_to_ptr.vmem [resolvable:$true] %s521_s14 }
  0x55   : > { %672 = vmatpush3.msra.mxu0 %v285_v0  ;;  %687 = vmatprep.mubr.msk.f32.mxu0 %vm293_vm0, %v274_v3  ;;  %v282_v4 = vld [vmem:[#allocation5 + $0x20] sm:$0xff]  ;;  %v409_v6 = vld [vmem:[#allocation7 + $0x70] sm:$0xff]  ;;  %v281_v7 = vld [vmem:[#allocation5 + $0x18] sm:$0xff]  ;;  %s508_s17 = scalar_lea.sflag [#allocation4], %s1126_s30  ;;  %s882_s16 = scalar_lea.vmem %s1159_s14, 512 }
  0x56   : > { %673 = vmatprep.subr.mxu0 %v284_v1  ;;  %693 = vmatprep.subr.mxu1 %v410_v5  ;;  %v408_v8 = vld [vmem:[#allocation7 + $0x68] sm:$0xff]  ;;  %v280_v9 = vld [vmem:[#allocation5 + $0x10] sm:$0xff]  ;;  %v407_v10 = vld [vmem:[#allocation7 + $0x60] sm:$0xff]  ;;  %p883_p5 = scmp.ne.s32.totalorder %s1159_s14, %s882_s16  ;;  %p1229_p2 = scmp.ne.s32.totalorder %s1222_s23, 0 }
  0x57   : > { %674 = vmatpush3.msra.mxu0 %v284_v1  ;;  %694 = vmatpush3.msra.mxu1 %v410_v5  ;;  %v279_v11 = vld [vmem:[#allocation5 + $0x8] sm:$0xff]  ;;  %v406_v12 = vld [vmem:[#allocation7 + $0x58] sm:$0xff]  ;;  %v278_v13 = vld [vmem:[#allocation5] sm:$0xff]  ;;  %s957_s22 = smov [#allocation8]  }
  0x58   : > { %675 = vmatprep.subr.mxu0 %v283_v2  ;;  %695 = vmatprep.subr.mxu1 %v409_v6  ;;  %v405_v14 = vld [vmem:[#allocation7 + $0x50] sm:$0xff]  ;;  %v275_v15 = vld [vmem:[%s1132_s13 + $0x8] sm:$0xff]  ;;  %v403_v18 = vld [vmem:[#allocation7 + $0x40] sm:$0xff]  ;;  %p884_p7 = pnand %p883_p5, %p1229_p2  ;;  %s886_s8 = sshll.u32 %s957_s22, 4  ;;  %s887_s8 = int_to_ptr.vmem [resolvable:$false] %s886_s8 }
  0x59   : > { %676 = vmatpush3.msra.mxu0 %v283_v2  ;;  %696 = vmatpush3.msra.mxu1 %v409_v6  ;;  %v404_v16 = vld [vmem:[#allocation7 + $0x48] sm:$0xff]  ;;  %v276_v17 = vld [vmem:[%s1132_s13 + $0x10] sm:$0xff]  ;;  %v277_v19 = vld [vmem:[%s1132_s13 + $0x18] sm:$0xff]  ;;  %s888_s29 = scalar_lea.vmem %s887_s8, 1024  ;;  %p889_p13 = scmp.lt.s32.totalorder %s1159_s14, %s887_s8 }
  0x5a   : > { %677 = vmatprep.subr.mxu0 %v282_v4  ;;  %697 = vmatprep.subr.mxu1 %v408_v8  ;;  %v402_v20 = vld [vmem:[#allocation7 + $0x38] sm:$0xff]  ;;  %v401_v21 = vld [vmem:[#allocation7 + $0x30] sm:$0xff]  ;;  %v400_v22 = vld [vmem:[#allocation7 + $0x28] sm:$0xff]  ;;  %p885_p12 = pneg %p884_p7  ;;  %p890_p0 = scmp.lt.s32.totalorder %s888_s29, %s882_s16 }
  0x5b   : > { %678 = vmatpush3.msra.mxu0 %v282_v4  ;;  %698 = vmatpush3.msra.mxu1 %v408_v8  ;;  %v399_v23 = vld [vmem:[#allocation7 + $0x20] sm:$0xff]  ;;  %v398_v24 = vld [vmem:[#allocation7 + $0x18] sm:$0xff]  ;;  %v397_v25 = vld [vmem:[#allocation7 + $0x10] sm:$0xff] }
  0x5c   : > { %679 = vmatprep.subr.mxu0 %v281_v7  ;;  %699 = vmatprep.subr.mxu1 %v407_v10  ;;  %v396_v26 = vld [vmem:[#allocation7 + $0x8] sm:$0xff]  ;;  %v395_v27 = vld [vmem:[#allocation7] sm:$0xff]  ;;  %p891_p10 = por %p890_p0, %p889_p13 }
  0x5d   : > { %680 = vmatpush3.msra.mxu0 %v281_v7  ;;  %700 = vmatpush3.msra.mxu1 %v407_v10  ;;  %v626_v28 = vld [vmem:[%s1209_s2] ss:$0 sm:$0xff] }
  0x5e   : > { %681 = vmatprep.subr.mxu0 %v280_v9  ;;  %701 = vmatprep.subr.mxu1 %v406_v12  ;;  %v631_v41 = vld [vmem:[%s1211_s4] ss:$0 sm:$0xff]  ;;  %p892_p3 = pnand %p891_p10, %p885_p12 }
  0x5f   : > { %682 = vmatpush3.msra.mxu0 %v280_v9  ;;  %702 = vmatpush3.msra.mxu1 %v406_v12 }
  0x60   : > { %683 = vmatprep.subr.mxu0 %v279_v11  ;;  %703 = vmatprep.subr.mxu1 %v405_v14 }
  0x61   : > { %684 = vmatpush3.msra.mxu0 %v279_v11  ;;  %704 = vmatpush3.msra.mxu1 %v405_v14 }
  0x62   : > { %685 = vmatprep.subr.mxu0 %v278_v13  ;;  %705 = vmatprep.subr.mxu1 %v404_v16 }
  0x63   : > { %686 = vmatpush3.msra.mxu0 %v278_v13  ;;  %706 = vmatpush3.msra.mxu1 %v404_v16 }
  0x64   : > { %688 = vmatmul.mubr.msk.f32.vlgmr.msra.gmra.mxu0 %vm293_vm0, %v275_v15  ;;  %707 = vmatprep.subr.mxu1 %v403_v18 }
  0x65   : > { %690 = vmatprep.mubr.msk.f32.mxu0 %vm293_vm0, %v276_v17  ;;  %708 = vmatpush3.msra.mxu1 %v403_v18 }
  0x66   : > { %709 = vmatprep.subr.mxu1 %v402_v20 }
  0x67   : > { %710 = vmatpush3.msra.mxu1 %v402_v20 }
  0x68   : > { %691 = vmatmul.mubr.msk.f32.gmra.mxu0 %vm293_vm0, %v277_v19  ;;  %711 = vmatprep.subr.mxu1 %v401_v21 }
  0x69   : > { %712 = vmatpush3.msra.mxu1 %v401_v21 }
  0x6a   : > { %713 = vmatprep.subr.mxu1 %v400_v22 }
  0x6b   : > { %714 = vmatpush3.msra.mxu1 %v400_v22 }
  0x6c   : > { %715 = vmatprep.subr.mxu1 %v399_v23 }
  0x6d   : > { %716 = vmatpush3.msra.mxu1 %v399_v23 }
  0x6e   : > { %717 = vmatprep.subr.mxu1 %v398_v24 }
  0x6f   : > { %718 = vmatpush3.msra.mxu1 %v398_v24 }
  0x70   : > { %719 = vmatprep.subr.mxu1 %v397_v25 }
  0x71   : > { %720 = vmatpush3.msra.mxu1 %v397_v25 }
  0x72   : > { %721 = vmatprep.subr.mxu1 %v396_v26 }
  0x73   : > { %722 = vmatpush3.msra.mxu1 %v396_v26 }
  0x74   : > { %723 = vmatprep.subr.mxu1 %v395_v27 }
  0x75   : > { %724 = vmatpush3.msra.mxu1 %v395_v27 }
 0x124   : > { %v689_v29 = vpop.f32.mrf.mxu0 }
 0x125   : > { %v378_v30 = vadd.f32 %v689_v29, %v626_v28 }
 0x126   : > { %v372_v31 = vpop.f32.mrf.mxu0 }
 0x127   : > { %v373_v32 = vadd.f32 %v626_v28, %v372_v31  ;;  %v392_v35 = vmax.f32 %v378_v30, 0.0 }
 0x128   : > { %v692_v33 = vpop.f32.mrf.mxu0 }
 0x129   : > { %v391_v34 = vmax.f32 %v373_v32, 0.0  ;;  %v388_v36 = vadd.f32 %v692_v33, %v626_v28 }
 0x12a   : > { %v382_v37 = vpop.f32.mrf.mxu0 }
 0x12b   : > { %v383_v38 = vadd.f32 %v626_v28, %v382_v37  ;;  %725 = vmatprep.mubr.f32.mxu1 %v391_v34  ;;  %v394_v40 = vmax.f32 %v388_v36, 0.0 }
 0x12c   : > { %726 = vmatmul.mubr.f32.vlgmr.msra.gmra.mxu1 %v392_v35 }
 0x12d   : > { %v393_v39 = vmax.f32 %v383_v38, 0.0 }
 0x12f   : > { %728 = vmatprep.mubr.f32.mxu1 %v393_v39 }
 0x130   : > { %729 = vmatmul.mubr.f32.gmra.mxu1 %v394_v40 }
 0x1ec   : > { %v727_v42 = vpop.f32.mrf.mxu1 }
 0x1ed   : > { %v490_v43 = vadd.f32 %v727_v42, %v631_v41 }
 0x1ee   : > { %v484_v44 = vpop.f32.mrf.mxu1 }
 0x1ef   : > { %504 = vst [vmem:[%s271_s12 + $0x8] sm:$0xff] %v490_v43  ;;  %v485_v45 = vadd.f32 %v631_v41, %v484_v44 }
 0x1f0   : > { %v730_v46 = vpop.f32.mrf.mxu1 }
 0x1f1   : > { %503 = vst [vmem:[%s271_s12] sm:$0xff] %v485_v45  ;;  %v500_v47 = vadd.f32 %v730_v46, %v631_v41 }
 0x1f2   : > { %v494_v48 = vpop.f32.mrf.mxu1 }
 0x1f3   : > { %506 = vst [vmem:[%s271_s12 + $0x18] sm:$0xff] %v500_v47  ;;  %v495_v49 = vadd.f32 %v631_v41, %v494_v48 }
 0x1f5   : > { %505 = vst [vmem:[%s271_s12 + $0x10] sm:$0xff] %v495_v49 }
 0x1f6   : > { %895 = shalt.err (!%p892_p3)
}
 0x1f7   : > { %s896_s13 = scalar_lea.hbm %s1164_s11, 512  ;;  %s900_s9 = scalar_lea.hbm %s1212_s5, 1024 }
 0x1f8   : > { %p897_p11 = scmp.ne.s32.totalorder %s1164_s11, %s896_s13  ;;  %p901_p4 = scmp.lt.s32.totalorder %s1164_s11, %s1212_s5 }
 0x1f9   : > { %p902_p6 = scmp.lt.s32.totalorder %s900_s9, %s896_s13 }
 0x1fa   : > { %p898_p9 = pnand %p897_p11, %p1229_p2 }
 0x1fb   : > { %p903_p8 = por %p902_p6, %p901_p4 }
 0x1fc   : > { %p899_p1 = pneg %p898_p9 }
 0x1fe   : > { %p904_p5 = pnand %p903_p8, %p899_p1 }
 0x200   : > { %907 = shalt.err (!%p904_p5)
}
 0x201   : > { %s958_s6 = smov 128   ;;  %s959_s7 = smov 8  }
 0x202   : > { %741 = dma.vmem_to_hbm [thread:$0]  (%p1229_p2), %s1159_s14, 512, %s1164_s11, %s508_s17, %s958_s6, %s958_s6, %s959_s7  }
 0x203 PF: > { %s536_s28 = sand.u32 1, %s938_s18   ;;  %p1230_p7 = scmp.ne.s32.totalorder %s1219_s25, 0 }
 0x204   : > { %p1231_p12 = scmp.ge.s32.totalorder %s950_s21, 2  ;;  %s537_s16 = scalar_lea.sflag [#allocation4], %s536_s28 }
 0x206   : > { %p755_p13 = pnand %p1231_p12, %p1230_p7 }
 0x208   : > { %p756_p0 = pneg %p755_p13 }
 0x20a   : > { %933 = dma.done.wait (%p756_p0), %s537_s16, 512  }
 0x20b   : > { %935 = vsyncadd (%p756_p0), %s537_s16, 4294966784  ;;  %p19_p10 = scmp.ge.s32.totalorder %s1068_s15, 4   ;;  %s1232_s18 = smov %s942_s19 }
 0x20c   : > { %s1233_s19 = smov %s946_s20  ;;  %s1234_s20 = smov %s1084_s27 }
 0x20d   : > { %s1235_s21 = smov %s1068_s15  ;;  %21 = sbr.rel (!%p19_p10) target bundleno = 6 (0x6), region = 93 }
 0x212   :  { %542 = vsyncpa [#allocation3], 1 }
 0x213   :  { %544 = vsyncpa [#allocation3 + $0x1], 1 }
 0x214   :  { %545 = vsyncpa [#allocation6], 1 }
 0x215   :  { %546 = vsyncpa [#allocation4], 1 }
 0x216   :  { %548 = vsyncpa [#allocation4 + $0x1], 1 }

</bundles_post_ra>
